<compile_context>
chip_gen: v7x
topology: tpu7x:2x2x1
jax: 0.10.0
libtpu: 0.0.40
codegen_flags: <defaults>
</compile_context>

<pallas_src>
import functools

import jax
import jax.numpy as jnp
import numpy as np
from jax import lax
from jax.experimental import pallas as pl
from jax.experimental.pallas import tpu as pltpu


def _circ_shift(x2d, s, L):
    """result[:, l] = x2d[:, (l + s) % L]  (static shift, no zero-size concat pieces)."""
    m = s % L
    if m == 0:
        return x2d
    return jnp.concatenate([x2d[:, m:], x2d[:, :m]], axis=1)


def basic_block_kernel(x_ref, w_ref, b_ref, g_ref, beta_ref, o_ref, *, n_adj, dilation, eps):
    """Fused dilated circular conv1d + bias + ReLU + BatchNorm1d (batch stats).

    x_ref    : (B, C, L)      input (f32 or bf16)
    w_ref    : (O, K*C)       conv weight, row index = k*C + c  (f32 or bf16)
    b_ref    : (O, 1)  f32    conv bias
    g_ref    : (O, 1)  f32    BN gamma
    beta_ref : (O, 1)  f32    BN beta
    o_ref    : (O, B*L) f32   lane-dense output; out[o, b*L + l]
    """
    B, C, L = x_ref.shape
    O, KC = w_ref.shape
    K = KC // C  # = 2*n_adj + 1

    # ---- build the im2col matrix X2 (K*C, B*L) with in-kernel circular wrap ----------
    # X2[k*C + c, b*L + l] = x[b, c, (l + (k - n_adj)*dilation) mod L]
    cols = []
    for b in range(B):                       # B is small & static -> unrolled
        xb = x_ref[b]                        # (C, L): free leading-axis view + load
        rows = [_circ_shift(xb, (k - n_adj) * dilation, L) for k in range(K)]
        cols.append(jnp.concatenate(rows, axis=0))   # (K*C, L), sublane-aligned concat
    x2 = jnp.concatenate(cols, axis=1)       # (K*C, B*L), lane concat at L multiples

    # ---- one MXU contraction: (O, K*C) @ (K*C, B*L) -> f32 accumulate ------------------
    y = jnp.dot(w_ref[...], x2, preferred_element_type=jnp.float32)   # (O, B*L) f32

    # ---- bias + ReLU --------------------------------------------------------------------
    y = jnp.maximum(y + b_ref[...], 0.0)     # (O,1) broadcasts over lanes

    # ---- BatchNorm1d (training-mode batch stats), single-pass sum / sum-of-squares -----
    n = y.shape[1]                           # B*L, static
    inv_n = 1.0 / float(n)
    s1 = jnp.sum(y, axis=1, keepdims=True)           # (O, 1)
    s2 = jnp.sum(y * y, axis=1, keepdims=True)       # (O, 1)
    mean = s1 * inv_n
    var = jnp.maximum(s2 * inv_n - mean * mean, 0.0)  # biased variance
    scale = g_ref[...] * lax.rsqrt(var + eps)         # gamma / sqrt(var + eps)   (EUP)
    shift = beta_ref[...] - mean * scale              # folded affine
    o_ref[...] = (y * scale + shift).astype(o_ref.dtype)


def basic_block(x, w, bias, gamma, beta, *, n_adj=4, dilation=1, eps=1e-5, compute_dtype=None):
    """x: (B, C, L). w: (O, C, K). Returns (B, O, L) float32 (same as the PyTorch module)."""
    B, C, L = x.shape
    O, Cw, K = w.shape
    assert Cw == C and K == 2 * n_adj + 1
    assert n_adj * dilation <= L, "circular pad wider than the signal"

    # Pre-permute the weight so the kernel contraction axis is K*C (row index = k*C + c).
    w2 = jnp.transpose(w, (0, 2, 1)).reshape(O, K * C)

    x_in = x
    if compute_dtype is not None:            # bf16 MXU operands on v6e/v7x; epilogue stays f32
        x_in = x.astype(compute_dtype)
        w2 = w2.astype(compute_dtype)

    bias2 = bias.reshape(O, 1).astype(jnp.float32)
    gamma2 = gamma.reshape(O, 1).astype(jnp.float32)
    beta2 = beta.reshape(O, 1).astype(jnp.float32)

    kern = functools.partial(basic_block_kernel, n_adj=n_adj, dilation=dilation, eps=eps)

    y2 = pl.pallas_call(
        kern,
        out_shape=jax.ShapeDtypeStruct((O, B * L), jnp.float32),
        grid=(1,),
        in_specs=[
            pl.BlockSpec((B, C, L), lambda i: (0, 0, 0)),
            pl.BlockSpec((O, K * C), lambda i: (0, 0)),
            pl.BlockSpec((O, 1), lambda i: (0, 0)),
            pl.BlockSpec((O, 1), lambda i: (0, 0)),
            pl.BlockSpec((O, 1), lambda i: (0, 0)),
        ],
        out_specs=pl.BlockSpec((O, B * L), lambda i: (0, 0)),
        compiler_params=pltpu.CompilerParams(dimension_semantics=("arbitrary",)),
    )(x_in, w2, bias2, gamma2, beta2)

    # Lane-dense (O, B*L) -> (B, O, L): pure layout plumbing outside the kernel.
    return jnp.transpose(y2.reshape(O, B, L), (1, 0, 2)).astype(jnp.float32)


def basic_block_reference(x, w, bias, gamma, beta, *, n_adj=4, dilation=1, eps=1e-5):
    """Pure-JAX reference mirroring the PyTorch module (training-mode BatchNorm1d)."""
    pad = n_adj * dilation
    xp = jnp.concatenate([x[..., -pad:], x, x[..., :pad]], axis=2) if n_adj != 0 else x
    y = lax.conv_general_dilated(
        xp, w, window_strides=(1,), padding=[(0, 0)], rhs_dilation=(dilation,),
        dimension_numbers=("NCH", "OIH", "NCH"))
    y = y + bias[None, :, None]
    y = jnp.maximum(y, 0.0)
    mean = jnp.mean(y, axis=(0, 2), keepdims=True)
    var = jnp.mean((y - mean) ** 2, axis=(0, 2), keepdims=True)
    y = (y - mean) * lax.rsqrt(var + eps)
    return y * gamma[None, :, None] + beta[None, :, None]


if __name__ == "__main__":
    # BasicBlock(state_dim=8, out_state_dim=8, conv_type='dgrid', n_adj=4)
    # L=128 contour points (typical snake setting) keeps the lane dim dense.
    B, C, O, L = 2, 8, 8, 128
    n_adj = 4
    K = 2 * n_adj + 1

    key = jax.random.PRNGKey(0)
    kx, kw, kb, kg, kbt = jax.random.split(key, 5)
    x = jax.random.normal(kx, (B, C, L), dtype=jnp.float32)
    w = jax.random.normal(kw, (O, C, K), dtype=jnp.float32) * 0.1
    bias = jax.random.normal(kb, (O,), dtype=jnp.float32) * 0.1
    gamma = 1.0 + 0.1 * jax.random.normal(kg, (O,), dtype=jnp.float32)
    beta = 0.1 * jax.random.normal(kbt, (O,), dtype=jnp.float32)

    # 'grid' block (dilation=1), f32 path
    out = jax.block_until_ready(basic_block(x, w, bias, gamma, beta, n_adj=n_adj, dilation=1))
    ref = jax.block_until_ready(basic_block_reference(x, w, bias, gamma, beta, n_adj=n_adj, dilation=1))
    assert out.shape == (B, O, L)
    np.testing.assert_allclose(np.asarray(out), np.asarray(ref), rtol=2e-3, atol=2e-3)

    # 'dgrid' block (dilation=2), f32 path
    out2 = jax.block_until_ready(basic_block(x, w, bias, gamma, beta, n_adj=n_adj, dilation=2))
    ref2 = jax.block_until_ready(basic_block_reference(x, w, bias, gamma, beta, n_adj=n_adj, dilation=2))
    np.testing.assert_allclose(np.asarray(out2), np.asarray(ref2), rtol=2e-3, atol=2e-3)

    # bf16 MXU-operand path (v6e/v7x), loose tolerance vs f32 reference
    out3 = jax.block_until_ready(
        basic_block(x, w, bias, gamma, beta, n_adj=n_adj, dilation=1, compute_dtype=jnp.bfloat16))
    np.testing.assert_allclose(np.asarray(out3), np.asarray(ref), rtol=1e-1, atol=1e-1)

    print("KERNEL_OK")
</pallas_src>

<mosaic_0001>
module attributes {stable_mosaic.version = 11 : i64} {
  func.func @basic_block_kernel(%arg0: i32, %arg1: memref<2x8x128xf32, #tpu.memory_space<vmem>>, %arg2: memref<8x72xf32, #tpu.memory_space<vmem>>, %arg3: memref<8x1xf32, #tpu.memory_space<vmem>>, %arg4: memref<8x1xf32, #tpu.memory_space<vmem>>, %arg5: memref<8x1xf32, #tpu.memory_space<vmem>>, %arg6: memref<8x256xf32, #tpu.memory_space<vmem>>) attributes {dimension_semantics = [#tpu.dimension_semantics<arbitrary>], iteration_bounds = array<i64: 1>, scalar_prefetch = 0 : i64, scratch_operands = 0 : i64, tpu.core_type = #tpu.core_type<tc>, window_params = [{pipeline_mode = #tpu.pipeline_mode<synchronous>, transform_indices = @transform_0, window_bounds = array<i64: 2, 8, 128>}, {pipeline_mode = #tpu.pipeline_mode<synchronous>, transform_indices = @transform_1, window_bounds = array<i64: 8, 72>}, {pipeline_mode = #tpu.pipeline_mode<synchronous>, transform_indices = @transform_2, window_bounds = array<i64: 8, 1>}, {pipeline_mode = #tpu.pipeline_mode<synchronous>, transform_indices = @transform_3, window_bounds = array<i64: 8, 1>}, {pipeline_mode = #tpu.pipeline_mode<synchronous>, transform_indices = @transform_4, window_bounds = array<i64: 8, 1>}, {pipeline_mode = #tpu.pipeline_mode<synchronous>, transform_indices = @transform_5, window_bounds = array<i64: 8, 256>}]} {
    %c0 = arith.constant 0 : index
    %c0_0 = arith.constant 0 : index
    %c0_1 = arith.constant 0 : index
    %0 = vector.load %arg1[%c0, %c0_0, %c0_1] : memref<2x8x128xf32, #tpu.memory_space<vmem>>, vector<1x8x128xf32>
    %1 = vector.shape_cast %0 : vector<1x8x128xf32> to vector<8x128xf32>
    %2 = vector.extract_strided_slice %1 {offsets = [0, 124], sizes = [8, 4], strides = [1, 1]} : vector<8x128xf32> to vector<8x4xf32>
    %3 = vector.extract_strided_slice %1 {offsets = [0, 0], sizes = [8, 124], strides = [1, 1]} : vector<8x128xf32> to vector<8x124xf32>
    %4 = tpu.concatenate %2, %3 in 1 : vector<8x4xf32>, vector<8x124xf32> -> vector<8x128xf32>
    %5 = vector.extract_strided_slice %1 {offsets = [0, 125], sizes = [8, 3], strides = [1, 1]} : vector<8x128xf32> to vector<8x3xf32>
    %6 = vector.extract_strided_slice %1 {offsets = [0, 0], sizes = [8, 125], strides = [1, 1]} : vector<8x128xf32> to vector<8x125xf32>
    %7 = tpu.concatenate %5, %6 in 1 : vector<8x3xf32>, vector<8x125xf32> -> vector<8x128xf32>
    %8 = vector.extract_strided_slice %1 {offsets = [0, 126], sizes = [8, 2], strides = [1, 1]} : vector<8x128xf32> to vector<8x2xf32>
    %9 = vector.extract_strided_slice %1 {offsets = [0, 0], sizes = [8, 126], strides = [1, 1]} : vector<8x128xf32> to vector<8x126xf32>
    %10 = tpu.concatenate %8, %9 in 1 : vector<8x2xf32>, vector<8x126xf32> -> vector<8x128xf32>
    %11 = vector.extract_strided_slice %1 {offsets = [0, 127], sizes = [8, 1], strides = [1, 1]} : vector<8x128xf32> to vector<8x1xf32>
    %12 = vector.extract_strided_slice %1 {offsets = [0, 0], sizes = [8, 127], strides = [1, 1]} : vector<8x128xf32> to vector<8x127xf32>
    %13 = tpu.concatenate %11, %12 in 1 : vector<8x1xf32>, vector<8x127xf32> -> vector<8x128xf32>
    %14 = vector.extract_strided_slice %1 {offsets = [0, 1], sizes = [8, 127], strides = [1, 1]} : vector<8x128xf32> to vector<8x127xf32>
    %15 = vector.extract_strided_slice %1 {offsets = [0, 0], sizes = [8, 1], strides = [1, 1]} : vector<8x128xf32> to vector<8x1xf32>
    %16 = tpu.concatenate %14, %15 in 1 : vector<8x127xf32>, vector<8x1xf32> -> vector<8x128xf32>
    %17 = vector.extract_strided_slice %1 {offsets = [0, 2], sizes = [8, 126], strides = [1, 1]} : vector<8x128xf32> to vector<8x126xf32>
    %18 = vector.extract_strided_slice %1 {offsets = [0, 0], sizes = [8, 2], strides = [1, 1]} : vector<8x128xf32> to vector<8x2xf32>
    %19 = tpu.concatenate %17, %18 in 1 : vector<8x126xf32>, vector<8x2xf32> -> vector<8x128xf32>
    %20 = vector.extract_strided_slice %1 {offsets = [0, 3], sizes = [8, 125], strides = [1, 1]} : vector<8x128xf32> to vector<8x125xf32>
    %21 = vector.extract_strided_slice %1 {offsets = [0, 0], sizes = [8, 3], strides = [1, 1]} : vector<8x128xf32> to vector<8x3xf32>
    %22 = tpu.concatenate %20, %21 in 1 : vector<8x125xf32>, vector<8x3xf32> -> vector<8x128xf32>
    %23 = vector.extract_strided_slice %1 {offsets = [0, 4], sizes = [8, 124], strides = [1, 1]} : vector<8x128xf32> to vector<8x124xf32>
    %24 = vector.extract_strided_slice %1 {offsets = [0, 0], sizes = [8, 4], strides = [1, 1]} : vector<8x128xf32> to vector<8x4xf32>
    %25 = tpu.concatenate %23, %24 in 1 : vector<8x124xf32>, vector<8x4xf32> -> vector<8x128xf32>
    %26 = tpu.concatenate %4, %7, %10, %13, %1, %16, %19, %22, %25 in 0 : vector<8x128xf32>, vector<8x128xf32>, vector<8x128xf32>, vector<8x128xf32>, vector<8x128xf32>, vector<8x128xf32>, vector<8x128xf32>, vector<8x128xf32>, vector<8x128xf32> -> vector<72x128xf32>
    %c1 = arith.constant 1 : index
    %c0_2 = arith.constant 0 : index
    %c0_3 = arith.constant 0 : index
    %27 = vector.load %arg1[%c1, %c0_2, %c0_3] : memref<2x8x128xf32, #tpu.memory_space<vmem>>, vector<1x8x128xf32>
    %28 = vector.shape_cast %27 : vector<1x8x128xf32> to vector<8x128xf32>
    %29 = vector.extract_strided_slice %28 {offsets = [0, 124], sizes = [8, 4], strides = [1, 1]} : vector<8x128xf32> to vector<8x4xf32>
    %30 = vector.extract_strided_slice %28 {offsets = [0, 0], sizes = [8, 124], strides = [1, 1]} : vector<8x128xf32> to vector<8x124xf32>
    %31 = tpu.concatenate %29, %30 in 1 : vector<8x4xf32>, vector<8x124xf32> -> vector<8x128xf32>
    %32 = vector.extract_strided_slice %28 {offsets = [0, 125], sizes = [8, 3], strides = [1, 1]} : vector<8x128xf32> to vector<8x3xf32>
    %33 = vector.extract_strided_slice %28 {offsets = [0, 0], sizes = [8, 125], strides = [1, 1]} : vector<8x128xf32> to vector<8x125xf32>
    %34 = tpu.concatenate %32, %33 in 1 : vector<8x3xf32>, vector<8x125xf32> -> vector<8x128xf32>
    %35 = vector.extract_strided_slice %28 {offsets = [0, 126], sizes = [8, 2], strides = [1, 1]} : vector<8x128xf32> to vector<8x2xf32>
    %36 = vector.extract_strided_slice %28 {offsets = [0, 0], sizes = [8, 126], strides = [1, 1]} : vector<8x128xf32> to vector<8x126xf32>
    %37 = tpu.concatenate %35, %36 in 1 : vector<8x2xf32>, vector<8x126xf32> -> vector<8x128xf32>
    %38 = vector.extract_strided_slice %28 {offsets = [0, 127], sizes = [8, 1], strides = [1, 1]} : vector<8x128xf32> to vector<8x1xf32>
    %39 = vector.extract_strided_slice %28 {offsets = [0, 0], sizes = [8, 127], strides = [1, 1]} : vector<8x128xf32> to vector<8x127xf32>
    %40 = tpu.concatenate %38, %39 in 1 : vector<8x1xf32>, vector<8x127xf32> -> vector<8x128xf32>
    %41 = vector.extract_strided_slice %28 {offsets = [0, 1], sizes = [8, 127], strides = [1, 1]} : vector<8x128xf32> to vector<8x127xf32>
    %42 = vector.extract_strided_slice %28 {offsets = [0, 0], sizes = [8, 1], strides = [1, 1]} : vector<8x128xf32> to vector<8x1xf32>
    %43 = tpu.concatenate %41, %42 in 1 : vector<8x127xf32>, vector<8x1xf32> -> vector<8x128xf32>
    %44 = vector.extract_strided_slice %28 {offsets = [0, 2], sizes = [8, 126], strides = [1, 1]} : vector<8x128xf32> to vector<8x126xf32>
    %45 = vector.extract_strided_slice %28 {offsets = [0, 0], sizes = [8, 2], strides = [1, 1]} : vector<8x128xf32> to vector<8x2xf32>
    %46 = tpu.concatenate %44, %45 in 1 : vector<8x126xf32>, vector<8x2xf32> -> vector<8x128xf32>
    %47 = vector.extract_strided_slice %28 {offsets = [0, 3], sizes = [8, 125], strides = [1, 1]} : vector<8x128xf32> to vector<8x125xf32>
    %48 = vector.extract_strided_slice %28 {offsets = [0, 0], sizes = [8, 3], strides = [1, 1]} : vector<8x128xf32> to vector<8x3xf32>
    %49 = tpu.concatenate %47, %48 in 1 : vector<8x125xf32>, vector<8x3xf32> -> vector<8x128xf32>
    %50 = vector.extract_strided_slice %28 {offsets = [0, 4], sizes = [8, 124], strides = [1, 1]} : vector<8x128xf32> to vector<8x124xf32>
    %51 = vector.extract_strided_slice %28 {offsets = [0, 0], sizes = [8, 4], strides = [1, 1]} : vector<8x128xf32> to vector<8x4xf32>
    %52 = tpu.concatenate %50, %51 in 1 : vector<8x124xf32>, vector<8x4xf32> -> vector<8x128xf32>
    %53 = tpu.concatenate %31, %34, %37, %40, %28, %43, %46, %49, %52 in 0 : vector<8x128xf32>, vector<8x128xf32>, vector<8x128xf32>, vector<8x128xf32>, vector<8x128xf32>, vector<8x128xf32>, vector<8x128xf32>, vector<8x128xf32>, vector<8x128xf32> -> vector<72x128xf32>
    %54 = tpu.concatenate %26, %53 in 1 : vector<72x128xf32>, vector<72x128xf32> -> vector<72x256xf32>
    %c0_4 = arith.constant 0 : index
    %c0_5 = arith.constant 0 : index
    %55 = vector.load %arg2[%c0_4, %c0_5] : memref<8x72xf32, #tpu.memory_space<vmem>>, vector<8x72xf32>
    %cst = arith.constant dense<0.000000e+00> : vector<8x256xf32>
    %56 = tpu.matmul %55, %54, %cst {dimension_numbers = #tpu.dot_dimension_numbers<[1], [0], [0], [1], [0, 0, 1, 1], [], []>} : vector<8x72xf32>, vector<72x256xf32>, vector<8x256xf32> -> vector<8x256xf32>
    %c0_6 = arith.constant 0 : index
    %c0_7 = arith.constant 0 : index
    %57 = vector.load %arg3[%c0_6, %c0_7] : memref<8x1xf32, #tpu.memory_space<vmem>>, vector<8x1xf32>
    %58 = vector.broadcast %57 : vector<8x1xf32> to vector<8x256xf32>
    %59 = arith.addf %56, %58 : vector<8x256xf32>
    %cst_8 = arith.constant 0.000000e+00 : f32
    %60 = vector.broadcast %cst_8 : f32 to vector<8x256xf32>
    %61 = arith.maximumf %59, %60 : vector<8x256xf32>
    %cst_9 = arith.constant dense<0.000000e+00> : vector<8xf32>
    %62 = vector.multi_reduction <add>, %61, %cst_9 [1] : vector<8x256xf32> to vector<8xf32>
    %63 = vector.shape_cast %62 : vector<8xf32> to vector<8x1xf32>
    %64 = arith.mulf %61, %61 : vector<8x256xf32>
    %cst_10 = arith.constant dense<0.000000e+00> : vector<8xf32>
    %65 = vector.multi_reduction <add>, %64, %cst_10 [1] : vector<8x256xf32> to vector<8xf32>
    %66 = vector.shape_cast %65 : vector<8xf32> to vector<8x1xf32>
    %cst_11 = arith.constant 3.906250e-03 : f32
    %67 = vector.broadcast %cst_11 : f32 to vector<8x1xf32>
    %68 = arith.mulf %63, %67 : vector<8x1xf32>
    %cst_12 = arith.constant 3.906250e-03 : f32
    %69 = vector.broadcast %cst_12 : f32 to vector<8x1xf32>
    %70 = arith.mulf %66, %69 : vector<8x1xf32>
    %71 = arith.mulf %68, %68 : vector<8x1xf32>
    %72 = arith.subf %70, %71 : vector<8x1xf32>
    %cst_13 = arith.constant 0.000000e+00 : f32
    %73 = vector.broadcast %cst_13 : f32 to vector<8x1xf32>
    %74 = arith.maximumf %72, %73 : vector<8x1xf32>
    %c0_14 = arith.constant 0 : index
    %c0_15 = arith.constant 0 : index
    %75 = vector.load %arg4[%c0_14, %c0_15] : memref<8x1xf32, #tpu.memory_space<vmem>>, vector<8x1xf32>
    %cst_16 = arith.constant 9.99999974E-6 : f32
    %76 = vector.broadcast %cst_16 : f32 to vector<8x1xf32>
    %77 = arith.addf %74, %76 : vector<8x1xf32>
    %78 = math.rsqrt %77 : vector<8x1xf32>
    %79 = arith.mulf %75, %78 : vector<8x1xf32>
    %c0_17 = arith.constant 0 : index
    %c0_18 = arith.constant 0 : index
    %80 = vector.load %arg5[%c0_17, %c0_18] : memref<8x1xf32, #tpu.memory_space<vmem>>, vector<8x1xf32>
    %81 = arith.mulf %68, %79 : vector<8x1xf32>
    %82 = arith.subf %80, %81 : vector<8x1xf32>
    %83 = vector.broadcast %79 : vector<8x1xf32> to vector<8x256xf32>
    %84 = arith.mulf %61, %83 : vector<8x256xf32>
    %85 = vector.broadcast %82 : vector<8x1xf32> to vector<8x256xf32>
    %86 = arith.addf %84, %85 : vector<8x256xf32>
    %c0_19 = arith.constant 0 : index
    %c0_20 = arith.constant 0 : index
    %87 = vector.load %arg6[%c0_19, %c0_20] : memref<8x256xf32, #tpu.memory_space<vmem>>, vector<8x256xf32>
    tpu.vector_store %arg6[%c0_19, %c0_20], %86 {strides = array<i32>} : memref<8x256xf32, #tpu.memory_space<vmem>>, vector<8x256xf32>,
    return
  }
  func.func @transform_0(%arg0: i32) -> (i32, i32, i32) {
    %c0_i32 = arith.constant 0 : i32
    %c0_i32_0 = arith.constant 0 : i32
    %c0_i32_1 = arith.constant 0 : i32
    %c0_i32_2 = arith.constant 0 : i32
    return %c0_i32, %c0_i32_0, %c0_i32_1 : i32, i32, i32
  }
  func.func @transform_1(%arg0: i32) -> (i32, i32) {
    %c0_i32 = arith.constant 0 : i32
    %c0_i32_0 = arith.constant 0 : i32
    %c0_i32_1 = arith.constant 0 : i32
    return %c0_i32, %c0_i32_0 : i32, i32
  }
  func.func @transform_2(%arg0: i32) -> (i32, i32) {
    %c0_i32 = arith.constant 0 : i32
    %c0_i32_0 = arith.constant 0 : i32
    %c0_i32_1 = arith.constant 0 : i32
    return %c0_i32, %c0_i32_0 : i32, i32
  }
  func.func @transform_3(%arg0: i32) -> (i32, i32) {
    %c0_i32 = arith.constant 0 : i32
    %c0_i32_0 = arith.constant 0 : i32
    %c0_i32_1 = arith.constant 0 : i32
    return %c0_i32, %c0_i32_0 : i32, i32
  }
  func.func @transform_4(%arg0: i32) -> (i32, i32) {
    %c0_i32 = arith.constant 0 : i32
    %c0_i32_0 = arith.constant 0 : i32
    %c0_i32_1 = arith.constant 0 : i32
    return %c0_i32, %c0_i32_0 : i32, i32
  }
  func.func @transform_5(%arg0: i32) -> (i32, i32) {
    %c0_i32 = arith.constant 0 : i32
    %c0_i32_0 = arith.constant 0 : i32
    %c0_i32_1 = arith.constant 0 : i32
    return %c0_i32, %c0_i32_0 : i32, i32
  }
}

</mosaic_0001>

<bundles_post_ra>
// kernel: tpu_custom_call.1
= control target key start
LH: loop header
LB: loop body
LE: loop exit
PB: predicated region body
PF: predicated region fallthrough
CT: control target
= control target key end

     0   :  { %s371_s0 = inlined_call_operand.vmem [shape: f32[2,8,128], index: 0, kind: input, shape index: {}]   ;;  %s372_s1 = inlined_call_operand.vmem [shape: f32[8,72], index: 1, kind: input, shape index: {}]   ;;  %s373_s2 = inlined_call_operand.vmem [shape: f32[8,1], index: 2, kind: input, shape index: {}]   ;;  %s374_s3 = inlined_call_operand.vmem [shape: f32[8,1], index: 3, kind: input, shape index: {}]   ;;  %s375_s4 = inlined_call_operand.vmem [shape: f32[8,1], index: 4, kind: input, shape index: {}]   ;;  %s376_s5 = inlined_call_operand.hbm [shape: f32[8,256], index: 5, kind: output, shape index: {}]  }
   0x1   :  { %v21_v0 = vld [vmem:[%s371_s0] sm:$0xff]  ;;  %v208_v1 = vld [vmem:[%s371_s0 + $0x8] sm:$0xff] }
   0x2   :  { %10 = vsyncpa [#allocation3], 0  ;;  %v247_v2 = vpack.i.bf16 %v21_v0, %v208_v1  ;;  %s300_s22 = smov 2   ;;  %s301_s23 = smov 4   ;;  %v308_v3 = vmov 0.0   ;;  %v75_v4 = vld [vmem:[%s373_s2] sm:$0xff] }
   0x3   :  { %s302_s24 = smov 1   ;;  %s303_s25 = smov 3   ;;  %149 = vmatprep.mubr.f32.mxu0 %v308_v3  ;;  %v309_v5 = vmov 0   ;;  %v74_v37 = vld [vmem:[%s372_s1] sm:$0xff]  ;;  %vm81_vm0 = vcmask 588800  }
   0x4   :  { %248 = vrot.lane.b32.xlu1 %v247_v2, %s300_s22  ;;  %238 = vrot.lane.b32.xlu0 %v247_v2, %s301_s23  ;;  %s304_s26 = smov 127   ;;  %s305_s27 = smov 126   ;;  %v171_v57 = vld [vmem:[%s374_s3] sm:$0xff] }
   0x5   :  { %s306_s28 = smov 125   ;;  %s307_s29 = smov 124   ;;  %272 = vset.pattern.permute.xlu1 %v309_v5  ;;  %273 = vset.pattern.permute.xlu0 %v309_v5  ;;  %v175_v60 = vld [vmem:[%s375_s4] sm:$0xff] }
   0x6   :  { %s310_s10 = smov [#allocation2]  }
   0x7   :  { %s200_s11 = sshll.u32 %s310_s10, 4  ;;  %s201_s11 = int_to_ptr.vmem [resolvable:$true] %s200_s11 }
   0x8   :  { %253 = vrot.lane.b32.xlu1 %v247_v2, %s302_s24  ;;  %243 = vrot.lane.b32.xlu0 %v247_v2, %s303_s25  ;;  %s276_s3 = scalar_lea.vmem %s201_s11, 256  ;;  %p281_p1 = scmp.lt.s32.totalorder %s201_s11, %s201_s11 }
   0x9   :  { %p277_p0 = scmp.ne.s32.totalorder %s201_s11, %s276_s3  ;;  %p282_p2 = scmp.lt.s32.totalorder %s276_s3, %s276_s3 }
   0xb   :  { %p283_p3 = por %p282_p2, %p281_p1 }
   0xc   :  { %258 = vrot.lane.b32.xlu0 %v247_v2, %s304_s26  ;;  %263 = vrot.lane.b32.xlu1 %v247_v2, %s305_s27 }
   0xd   :  { %p284_p4 = pnand %p283_p3, %p277_p0 }
  0x10   :  { %268 = vrot.lane.b32.xlu0 %v247_v2, %s306_s28  ;;  %71 = vrot.lane.b32.xlu1 %v208_v1, %s307_s29 }
  0x14   :  { %44 = vrot.lane.b32.xlu0 %v21_v0, %s307_s29  ;;  %78 = vperm.xlu1 %272, %v75_v4  }
  0x76   :  { %v249_v6 = vpop.permute.xlu1 %248  ;;  %v239_v7 = vpop.permute.xlu0 %238 }
  0x77   :  { %v250_v8 = vunpack.i.l.bf16 %v249_v6  ;;  %v241_v9 = vunpack.i.h.bf16 %v239_v7  ;;  %v240_v12 = vunpack.i.l.bf16 %v239_v7  ;;  %v251_v18 = vunpack.i.h.bf16 %v249_v6 }
  0x7a   :  { %v254_v10 = vpop.permute.xlu1 %253  ;;  %v244_v11 = vpop.permute.xlu0 %243 }
  0x7b   :  { %v255_v13 = vunpack.i.l.bf16 %v254_v10  ;;  %v246_v14 = vunpack.i.h.bf16 %v244_v11  ;;  %v245_v15 = vunpack.i.l.bf16 %v244_v11  ;;  %v256_v19 = vunpack.i.h.bf16 %v254_v10 }
  0x7d   :  { %v210_v16 = vpack.c.bf16 %v245_v15, %v240_v12  ;;  %v212_v17 = vpack.c.bf16 %v246_v14, %v241_v9  ;;  %v214_v22 = vpack.c.bf16 %v255_v13, %v250_v8  ;;  %v216_v27 = vpack.c.bf16 %v256_v19, %v251_v18 }
  0x7e   :  { %v259_v20 = vpop.permute.xlu0 %258  ;;  %v264_v21 = vpop.permute.xlu1 %263 }
  0x7f   :  { %211 = vmatprep.subr.bf16.mxu0 %v210_v16  ;;  %v260_v23 = vunpack.i.l.bf16 %v259_v20  ;;  %v261_v24 = vunpack.i.h.bf16 %v259_v20  ;;  %v265_v26 = vunpack.i.l.bf16 %v264_v21  ;;  %v266_v31 = vunpack.i.h.bf16 %v264_v21 }
  0x80   :  { %213 = vmatpush1.bf16.msra.mxu0 %v212_v17 }
  0x81   :  { %215 = vmatprep.subr.bf16.mxu0 %v214_v22  ;;  %v218_v25 = vpack.c.bf16 %v260_v23, %v208_v1  ;;  %v220_v30 = vpack.c.bf16 %v261_v24, %v21_v0 }
  0x82   :  { %v269_v28 = vpop.permute.xlu0 %268  ;;  %v72_v35 = vpop.permute.xlu1 %71 }
  0x83   :  { %v270_v29 = vunpack.i.l.bf16 %v269_v28  ;;  %v271_v32 = vunpack.i.h.bf16 %v269_v28 }
  0x84   :  { %217 = vmatpush1.bf16.msra.mxu0 %v216_v27 }
  0x85   :  { %v222_v33 = vpack.c.bf16 %v270_v29, %v265_v26  ;;  %219 = vmatprep.subr.bf16.mxu0 %v218_v25  ;;  %v224_v34 = vpack.c.bf16 %v271_v32, %v266_v31 }
  0x86   :  { %v45_v36 = vpop.permute.xlu0 %44 }
  0x88   :  { %221 = vmatpush1.bf16.msra.mxu0 %v220_v30 }
  0x89   :  { %223 = vmatprep.subr.bf16.mxu0 %v222_v33 }
  0x8c   :  { %225 = vmatpush1.bf16.msra.mxu0 %v224_v34 }
  0x8d   :  { %101 = vmatprep.subr.mxu0 %v72_v35 }
  0x90   :  { %102 = vmatpush1.msra.mxu0 %v45_v36 }
  0x91   :  { %209 = vmatmul.mubr.msk.f32.vlgmr.msra.gmra.mrb[0].mxu0 %vm81_vm0, %v74_v37 }
  0x93   :  { %v79_v38 = vpop.permute.xlu1 %78 }
 0x164   :  { %v151_v39 = vpop.f32.mrb[0].mxu0 }
 0x165   :  { %v152_v40 = vadd.f32 %v151_v39, %v79_v38  ;;  %v153_v41 = vpop.f32.mrb[1].mxu0 }
 0x166   :  { %v154_v42 = vadd.f32 %v153_v41, %v79_v38 }
 0x167   :  { %v156_v43 = vmax.f32 %v152_v40, 0.0 }
 0x168   :  { %v157_v44 = vmax.f32 %v154_v42, 0.0 }
 0x169   :  { %v161_v45 = vmul.f32 %v156_v43, %v156_v43 }
 0x16a   :  { %v158_v46 = vadd.f32 %v157_v44, %v156_v43  ;;  %v162_v47 = vmul.f32 %v157_v44, %v157_v44 }
 0x16c   :  { %159 = vadd.xlane.f32.xlu0 %v158_v46  ;;  %v163_v48 = vadd.f32 %v162_v47, %v161_v45 }
 0x16e   :  { %164 = vadd.xlane.f32.xlu1 %v163_v48 }
 0x1f9   :  { %v160_v49 = vpop.xlane.xlu0 %159 }
 0x1fa   :  { %v166_v50 = vmul.f32 0.00390625, %v160_v49 }
 0x1fb   :  { %v165_v51 = vpop.xlane.xlu1 %164 }
 0x1fc   :  { %v168_v52 = vmul.f32 %v166_v50, %v166_v50  ;;  %v167_v53 = vmul.f32 0.00390625, %v165_v51 }
 0x1fe   :  { %v169_v54 = vsub.f32 %v167_v53, %v168_v52 }
 0x200   :  { %v170_v55 = vmax.f32 %v169_v54, 0.0 }
 0x202   :  { %v172_v56 = vadd.f32 1e-05, %v170_v55 }
 0x204   :  { %274 = vrsqrt.f32 %v172_v56 }
 0x20e   :  { %v275_v58 = vpop.eup %274 }
 0x20f   :  { %v174_v59 = vmul.f32 %v275_v58, %v171_v57 }
 0x211   :  { %180 = vperm.xlu0 %273, %v174_v59   ;;  %v176_v61 = vmul.f32 %v174_v59, %v166_v50 }
 0x213   :  { %v177_v62 = vsub.f32 %v175_v60, %v176_v61 }
 0x215   :  { %187 = vperm.xlu1 %272, %v177_v62  }
 0x290   :  { %v181_v63 = vpop.permute.xlu0 %180 }
 0x291   :  { %v183_v0 = vmul.f32 %v181_v63, %v156_v43  ;;  %v184_v1 = vmul.f32 %v181_v63, %v157_v44 }
 0x294   :  { %v188_v2 = vpop.permute.xlu1 %187 }
 0x295   :  { %v190_v3 = vadd.f32 %v188_v2, %v183_v0  ;;  %v191_v4 = vadd.f32 %v188_v2, %v184_v1 }
 0x297   :  { %192 = vst [vmem:[#allocation2] sm:$0xff] %v190_v3  ;;  %193 = vst [vmem:[#allocation2 + $0x8] sm:$0xff] %v191_v4 }
 0x298   :  { %287 = shalt.err (!%p284_p4)
}
 0x299   :  { %s288_s13 = scalar_lea.hbm %s376_s5, 256 }
 0x29a   :  { %p289_p5 = scmp.ne.s32.totalorder %s376_s5, %s288_s13  ;;  %p292_p6 = scmp.lt.u32.totalorder %s288_s13, %s376_s5 }
 0x29c   :  { %p294_p7 = pnand %p292_p6, %p289_p5 }
 0x29e   :  { %297 = shalt.err (!%p294_p7)
}
 0x29f   :  { %203 = dma.vmem_to_hbm [thread:$0]  %s201_s11, 256, %s376_s5, [#allocation3]  }
 0x2a0   :  { %298 = dma.done.wait [#allocation3], 256  }
 0x2a1   :  { %299 = vsyncadd [#allocation3], 4294967040 }
 0x2a2   :  { %207 = vsyncpa [#allocation3], 1 }

</bundles_post_ra>
